<compile_context>
chip_gen: v7x
topology: tpu7x:2x2x1
jax: 0.10.0
libtpu: 0.0.40
codegen_flags: <defaults>
</compile_context>

<pallas_src>
import functools

import jax
import jax.numpy as jnp
from jax import lax
from jax.experimental import pallas as pl
from jax.experimental.pallas import tpu as pltpu


def _round_up(v, m):
    return (v + m - 1) // m * m


def _dilated_conv_kernel(x_ref, w_ref, b_ref, o_ref, *, groups):
    # x_ref: (groups, cin_g*kSize, l_tile)   (batch dim squeezed away)
    # w_ref: (groups, cout_g, cin_g*kSize)
    # b_ref: (groups, cout_g, 1)             float32
    # o_ref: (groups, cout_g, l_tile)
    for g in range(groups):                       # static (small) python loop
        acc = jnp.dot(w_ref[g], x_ref[g],
                      preferred_element_type=jnp.float32)
        o_ref[g] = (acc + b_ref[g]).astype(o_ref.dtype)


def dilated_conv(x, w, b, *, kSize, stride=1, d=1, groups=1,
                 matmul_dtype=jnp.bfloat16,
                 max_l_tile=1024, l_tile_budget_bytes=6 << 20):
    """x: (N, C_in, L), w: (C_out, C_in//groups, kSize), b: (C_out,)."""
    N, C_in, L = x.shape
    C_out = w.shape[0]
    assert C_in % groups == 0 and C_out % groups == 0
    cin_g = C_in // groups
    cout_g = C_out // groups
    k_g = cin_g * kSize
    out_dtype = x.dtype

    pad = (kSize - 1) // 2 * d                    # PyTorch padding argument
    L_pad = L + 2 * pad
    L_out = (L_pad - d * (kSize - 1) - 1) // stride + 1

    # ---- wrapper-side layout plumbing (plain JAX, runs under XLA) ----------
    x_pad = jnp.pad(x, ((0, 0), (0, 0), (pad, pad)))
    # im2col: fold the kSize taps (with dilation d and stride) into the
    # contraction dimension.
    cols = []
    for k in range(kSize):
        start = k * d
        cols.append(lax.slice(
            x_pad, (0, 0, start),
            (N, C_in, start + stride * (L_out - 1) + 1),
            (1, 1, stride)))                      # (N, C_in, L_out)
    x_col = jnp.stack(cols, axis=2)               # (N, C_in, kSize, L_out)
    x_col = x_col.reshape(N, groups, k_g, L_out)  # row index = c*kSize + k

    # Pick a lane-dense L tile from a VMEM budget, pad L_out up to it.
    lane = 128
    msize = jnp.dtype(matmul_dtype).itemsize
    osize = jnp.dtype(out_dtype).itemsize
    bytes_per_col = 2 * groups * (_round_up(k_g, 8) * msize
                                  + _round_up(cout_g, 8) * osize)
    l_tile = min(max_l_tile, _round_up(L_out, lane))
    l_tile = max(lane, l_tile // lane * lane)
    while l_tile > lane and bytes_per_col * l_tile > l_tile_budget_bytes:
        l_tile -= lane
    L_out_pad = _round_up(L_out, l_tile)
    if L_out_pad != L_out:
        x_col = jnp.pad(x_col,
                        ((0, 0), (0, 0), (0, 0), (0, L_out_pad - L_out)))

    x_col = x_col.astype(matmul_dtype)
    w_r = w.reshape(groups, cout_g, k_g).astype(matmul_dtype)   # lane-dense K
    b_r = b.reshape(groups, cout_g, 1).astype(jnp.float32)

    n_l_tiles = L_out_pad // l_tile

    # Explicit VMEM budget: double-buffered x/out blocks + weights + bias.
    vmem_limit = int(
        2 * groups * l_tile * (_round_up(k_g, 8) * msize
                               + _round_up(cout_g, 8) * osize)
        + 2 * groups * _round_up(cout_g, 8) * (_round_up(k_g, lane) * msize
                                               + lane * 4)
        + (2 << 20))
    vmem_limit = max(4 << 20, min(vmem_limit, 48 << 20))

    kernel = functools.partial(_dilated_conv_kernel, groups=groups)

    out = pl.pallas_call(
        kernel,
        out_shape=jax.ShapeDtypeStruct((N, groups, cout_g, L_out_pad),
                                       out_dtype),
        grid_spec=pltpu.PrefetchScalarGridSpec(
            num_scalar_prefetch=0,
            grid=(N, n_l_tiles),
            in_specs=[
                pl.BlockSpec((None, groups, k_g, l_tile),
                             lambda n, lt: (n, 0, 0, lt)),
                pl.BlockSpec((groups, cout_g, k_g),
                             lambda n, lt: (0, 0, 0)),
                pl.BlockSpec((groups, cout_g, 1),
                             lambda n, lt: (0, 0, 0)),
            ],
            out_specs=pl.BlockSpec((None, groups, cout_g, l_tile),
                                   lambda n, lt: (n, 0, 0, lt)),
        ),
        compiler_params=pltpu.CompilerParams(
            dimension_semantics=("parallel", "parallel"),
            vmem_limit_bytes=vmem_limit),
    )(x_col, w_r, b_r)

    out = out.reshape(N, C_out, L_out_pad)
    if L_out_pad != L_out:
        out = out[:, :, :L_out]
    return out


def _reference(x, w, b, *, kSize, stride, d, groups):
    pad = (kSize - 1) // 2 * d
    return lax.conv_general_dilated(
        x, w, window_strides=(stride,), padding=[(pad, pad)],
        rhs_dilation=(d,), dimension_numbers=("NCH", "OIH", "NCH"),
        feature_group_count=groups) + b.reshape(1, -1, 1)


if __name__ == "__main__":
    key = jax.random.PRNGKey(0)

    # --- config 1: matches the module's typical use (dilated, grouped) ------
    nIn, nOut, kSize, stride, d, groups = 4, 8, 3, 1, 2, 2
    N, L = 2, 16
    kx, kw, kb, key = jax.random.split(key, 4)
    x = jax.random.normal(kx, (N, nIn, L), dtype=jnp.float32)
    fan_in = (nIn // groups) * kSize
    bound = 1.0 / (fan_in ** 0.5)
    w = jax.random.uniform(kw, (nOut, nIn // groups, kSize),
                           minval=-bound, maxval=bound, dtype=jnp.float32)
    b = jax.random.uniform(kb, (nOut,), minval=-bound, maxval=bound,
                           dtype=jnp.float32)

    out = dilated_conv(x, w, b, kSize=kSize, stride=stride, d=d, groups=groups)
    out = jax.block_until_ready(out)
    ref = _reference(x, w, b, kSize=kSize, stride=stride, d=d, groups=groups)
    assert out.shape == ref.shape, (out.shape, ref.shape)
    # default path uses bf16 MXU inputs -> relaxed tolerance
    assert jnp.allclose(out, ref, atol=3e-2, rtol=3e-2), \
        float(jnp.max(jnp.abs(out - ref)))

    # same config with f32 matmul operands -> tight tolerance
    out_f32 = dilated_conv(x, w, b, kSize=kSize, stride=stride, d=d,
                           groups=groups, matmul_dtype=jnp.float32)
    out_f32 = jax.block_until_ready(out_f32)
    assert jnp.allclose(out_f32, ref, atol=1e-5, rtol=1e-5), \
        float(jnp.max(jnp.abs(out_f32 - ref)))

    # --- config 2: exercises stride > 1 and odd length ----------------------
    nIn2, nOut2, kSize2, stride2, d2, groups2 = 6, 6, 5, 2, 1, 3
    N2, L2 = 2, 19
    kx2, kw2, kb2, key = jax.random.split(key, 4)
    x2 = jax.random.normal(kx2, (N2, nIn2, L2), dtype=jnp.float32)
    fan_in2 = (nIn2 // groups2) * kSize2
    bound2 = 1.0 / (fan_in2 ** 0.5)
    w2 = jax.random.uniform(kw2, (nOut2, nIn2 // groups2, kSize2),
                            minval=-bound2, maxval=bound2, dtype=jnp.float32)
    b2 = jax.random.uniform(kb2, (nOut2,), minval=-bound2, maxval=bound2,
                            dtype=jnp.float32)
    out2 = dilated_conv(x2, w2, b2, kSize=kSize2, stride=stride2, d=d2,
                        groups=groups2, matmul_dtype=jnp.float32)
    out2 = jax.block_until_ready(out2)
    ref2 = _reference(x2, w2, b2, kSize=kSize2, stride=stride2, d=d2,
                      groups=groups2)
    assert out2.shape == ref2.shape, (out2.shape, ref2.shape)
    assert jnp.allclose(out2, ref2, atol=1e-5, rtol=1e-5), \
        float(jnp.max(jnp.abs(out2 - ref2)))

    print("KERNEL_OK")
</pallas_src>

<mosaic_0001>
module attributes {stable_mosaic.version = 11 : i64} {
  func.func @_dilated_conv_kernel(%arg0: i32, %arg1: i32, %arg2: memref<1x2x6x128xbf16, #tpu.memory_space<vmem>>, %arg3: memref<2x4x6xbf16, #tpu.memory_space<vmem>>, %arg4: memref<2x4x1xf32, #tpu.memory_space<vmem>>, %arg5: memref<1x2x4x128xf32, #tpu.memory_space<vmem>>) attributes {dimension_semantics = [#tpu.dimension_semantics<parallel>, #tpu.dimension_semantics<parallel>], iteration_bounds = array<i64: 2, 1>, scalar_prefetch = 0 : i64, scratch_operands = 0 : i64, tpu.core_type = #tpu.core_type<tc>, window_params = [{transform_indices = @transform_0, window_bounds = array<i64: 1, 2, 6, 128>}, {pipeline_mode = #tpu.pipeline_mode<synchronous>, transform_indices = @transform_1, window_bounds = array<i64: 2, 4, 6>}, {pipeline_mode = #tpu.pipeline_mode<synchronous>, transform_indices = @transform_2, window_bounds = array<i64: 2, 4, 1>}, {transform_indices = @transform_3, window_bounds = array<i64: 1, 2, 4, 128>}]} {
    %c0 = arith.constant 0 : index
    %c0_0 = arith.constant 0 : index
    %c0_1 = arith.constant 0 : index
    %0 = vector.load %arg3[%c0, %c0_0, %c0_1] : memref<2x4x6xbf16, #tpu.memory_space<vmem>>, vector<1x4x6xbf16>
    %1 = vector.shape_cast %0 : vector<1x4x6xbf16> to vector<4x6xbf16>
    %c0_2 = arith.constant 0 : index
    %c0_3 = arith.constant 0 : index
    %c0_4 = arith.constant 0 : index
    %c0_5 = arith.constant 0 : index
    %2 = vector.load %arg2[%c0_2, %c0_3, %c0_4, %c0_5] : memref<1x2x6x128xbf16, #tpu.memory_space<vmem>>, vector<1x1x6x128xbf16>
    %3 = vector.shape_cast %2 : vector<1x1x6x128xbf16> to vector<6x128xbf16>
    %cst = arith.constant dense<0.000000e+00> : vector<4x128xf32>
    %4 = tpu.matmul %1, %3, %cst {dimension_numbers = #tpu.dot_dimension_numbers<[1], [0], [0], [1], [0, 0, 1, 1], [], []>} : vector<4x6xbf16>, vector<6x128xbf16>, vector<4x128xf32> -> vector<4x128xf32>
    %c0_6 = arith.constant 0 : index
    %c0_7 = arith.constant 0 : index
    %c0_8 = arith.constant 0 : index
    %5 = vector.load %arg4[%c0_6, %c0_7, %c0_8] : memref<2x4x1xf32, #tpu.memory_space<vmem>>, vector<1x4x1xf32>
    %6 = vector.shape_cast %5 : vector<1x4x1xf32> to vector<4x1xf32>
    %7 = vector.broadcast %6 : vector<4x1xf32> to vector<4x128xf32>
    %8 = arith.addf %4, %7 : vector<4x128xf32>
    %c0_9 = arith.constant 0 : index
    %c0_10 = arith.constant 0 : index
    %c0_11 = arith.constant 0 : index
    %c0_12 = arith.constant 0 : index
    %9 = vector.load %arg5[%c0_9, %c0_10, %c0_11, %c0_12] : memref<1x2x4x128xf32, #tpu.memory_space<vmem>>, vector<1x1x4x128xf32>
    %10 = vector.shape_cast %9 : vector<1x1x4x128xf32> to vector<4x128xf32>
    %11 = vector.shape_cast %8 : vector<4x128xf32> to vector<1x1x4x128xf32>
    tpu.vector_store %arg5[%c0_9, %c0_10, %c0_11, %c0_12], %11 {strides = array<i32>} : memref<1x2x4x128xf32, #tpu.memory_space<vmem>>, vector<1x1x4x128xf32>,
    %c1 = arith.constant 1 : index
    %c0_13 = arith.constant 0 : index
    %c0_14 = arith.constant 0 : index
    %12 = vector.load %arg3[%c1, %c0_13, %c0_14] : memref<2x4x6xbf16, #tpu.memory_space<vmem>>, vector<1x4x6xbf16>
    %13 = vector.shape_cast %12 : vector<1x4x6xbf16> to vector<4x6xbf16>
    %c0_15 = arith.constant 0 : index
    %c1_16 = arith.constant 1 : index
    %c0_17 = arith.constant 0 : index
    %c0_18 = arith.constant 0 : index
    %14 = vector.load %arg2[%c0_15, %c1_16, %c0_17, %c0_18] : memref<1x2x6x128xbf16, #tpu.memory_space<vmem>>, vector<1x1x6x128xbf16>
    %15 = vector.shape_cast %14 : vector<1x1x6x128xbf16> to vector<6x128xbf16>
    %cst_19 = arith.constant dense<0.000000e+00> : vector<4x128xf32>
    %16 = tpu.matmul %13, %15, %cst_19 {dimension_numbers = #tpu.dot_dimension_numbers<[1], [0], [0], [1], [0, 0, 1, 1], [], []>} : vector<4x6xbf16>, vector<6x128xbf16>, vector<4x128xf32> -> vector<4x128xf32>
    %c1_20 = arith.constant 1 : index
    %c0_21 = arith.constant 0 : index
    %c0_22 = arith.constant 0 : index
    %17 = vector.load %arg4[%c1_20, %c0_21, %c0_22] : memref<2x4x1xf32, #tpu.memory_space<vmem>>, vector<1x4x1xf32>
    %18 = vector.shape_cast %17 : vector<1x4x1xf32> to vector<4x1xf32>
    %19 = vector.broadcast %18 : vector<4x1xf32> to vector<4x128xf32>
    %20 = arith.addf %16, %19 : vector<4x128xf32>
    %c0_23 = arith.constant 0 : index
    %c1_24 = arith.constant 1 : index
    %c0_25 = arith.constant 0 : index
    %c0_26 = arith.constant 0 : index
    %21 = vector.load %arg5[%c0_23, %c1_24, %c0_25, %c0_26] : memref<1x2x4x128xf32, #tpu.memory_space<vmem>>, vector<1x1x4x128xf32>
    %22 = vector.shape_cast %21 : vector<1x1x4x128xf32> to vector<4x128xf32>
    %23 = vector.shape_cast %20 : vector<4x128xf32> to vector<1x1x4x128xf32>
    tpu.vector_store %arg5[%c0_23, %c1_24, %c0_25, %c0_26], %23 {strides = array<i32>} : memref<1x2x4x128xf32, #tpu.memory_space<vmem>>, vector<1x1x4x128xf32>,
    return
  }
  func.func @transform_0(%arg0: i32, %arg1: i32) -> (i32, i32, i32, i32) {
    %c0_i32 = arith.constant 0 : i32
    %c0_i32_0 = arith.constant 0 : i32
    %c0_i32_1 = arith.constant 0 : i32
    return %arg0, %c0_i32, %c0_i32_0, %arg1 : i32, i32, i32, i32
  }
  func.func @transform_1(%arg0: i32, %arg1: i32) -> (i32, i32, i32) {
    %c0_i32 = arith.constant 0 : i32
    %c0_i32_0 = arith.constant 0 : i32
    %c0_i32_1 = arith.constant 0 : i32
    %c0_i32_2 = arith.constant 0 : i32
    return %c0_i32, %c0_i32_0, %c0_i32_1 : i32, i32, i32
  }
  func.func @transform_2(%arg0: i32, %arg1: i32) -> (i32, i32, i32) {
    %c0_i32 = arith.constant 0 : i32
    %c0_i32_0 = arith.constant 0 : i32
    %c0_i32_1 = arith.constant 0 : i32
    %c0_i32_2 = arith.constant 0 : i32
    return %c0_i32, %c0_i32_0, %c0_i32_1 : i32, i32, i32
  }
  func.func @transform_3(%arg0: i32, %arg1: i32) -> (i32, i32, i32, i32) {
    %c0_i32 = arith.constant 0 : i32
    %c0_i32_0 = arith.constant 0 : i32
    %c0_i32_1 = arith.constant 0 : i32
    return %arg0, %c0_i32, %c0_i32_0, %arg1 : i32, i32, i32, i32
  }
}

</mosaic_0001>

<bundles_post_ra>
// kernel: tpu_custom_call.1
= control target key start
LH: loop header
LB: loop body
LE: loop exit
PB: predicated region body
PF: predicated region fallthrough
CT: control target
= control target key end

     0   :  { %8 = vsyncpa [#allocation3], 0  ;;  %s735_s0 = inlined_call_operand.vmem [shape: bf16[2,2,6,128], index: 0, kind: input, shape index: {}]   ;;  %s736_s1 = inlined_call_operand.vmem [shape: bf16[2,4,6], index: 1, kind: input, shape index: {}]   ;;  %s737_s2 = inlined_call_operand.vmem [shape: f32[2,4,1], index: 2, kind: input, shape index: {}]   ;;  %s738_s3 = inlined_call_operand.hbm [shape: f32[2,2,4,128], index: 3, kind: output, shape index: {}]  }
   0x1   :  { %10 = vsyncpa [#allocation3 + $0x1], 0  ;;  %s608_s12 = smov 0   ;;  %s610_s13 = smov 0  }
   0x2   :  { %s612_s14 = smov 0   ;;  %s614_s15 = smov 0  }
   0x3   :  { %s616_s16 = smov 0   ;;  %s618_s17 = smov 0  }
   0x4 LB: > { %s404_s18 = sadd.s32 4294967295, %s580_s17   ;;  %s405_s19 = sadd.s32 4294967294, %s580_s17   ;;  %s580_s17 = sphi %s618_s17, %s16_s17   ;;  %s576_s16 = sphi %s616_s16, %s745_s16   ;;  %s572_s15 = sphi %s614_s15, %s744_s15   ;;  %s568_s14 = sphi %s612_s14, %s743_s14   ;;  %s564_s13 = sphi %s610_s13, %s742_s13   ;;  %s560_s12 = sphi %s608_s12, %s741_s12  }
   0x5   : > { %s28_s20 = sadd.s32 1, %s576_s16  ;;  %s107_s21 = sadd.s32 1, %s568_s14 }
   0x6   : > { %p30_p0 = scmp.ge.s32.totalorder %s28_s20, 2  ;;  %p117_p1 = scmp.ne.s32.totalorder %s568_s14, %s564_s13 }
   0x7   : > { %p118_p2 = scmp.eq.s32.totalorder %s404_s18, 1  ;;  %p123_p3 = scmp.ne.s32.totalorder %s564_s13, %s560_s12 }
   0x8   : > { %s747_s20 = smov (%p30_p0, %s28_s20), 0  ;;  %p124_p5 = scmp.eq.s32.totalorder %s405_s19, 1 }
   0x9   : > { %p648_p4 = por %p118_p2, %p117_p1  ;;  %s102_s23 = ssub.s32 %s576_s16, %s747_s20 }
   0xa   : > { %p408_p6 = scmp.ge.s32.totalorder %s580_s17, 1  ;;  %p105_p7 = scmp.eq.s32.totalorder %s102_s23, 0 }
   0xb   : > { %p655_p8 = por %p124_p5, %p123_p3  ;;  %p159_p9 = scmp.lt.s32.totalorder %s580_s17, 3 }
   0xc   : > { %s661_s25 = scalar_select %p105_p7, %s568_s14, %s107_s21  }
   0xd   : > { %p160_p10 = pnand %p408_p6, %p159_p9 }
   0xe   : > { %p186_p11 = scmp.lt.s32.totalorder (!%p160_p10), %s572_s15, 1  ;;  %v582_v0 = vmov (!%p160_p10), 0.0   ;;  %v197_v1 = vld [vmem:[%s737_s2] sm:$0xf] (!%p160_p10)  ;;  %vm583_vm0 = vmmov (!%p160_p10), 0   ;;  %v584_v2 = vmov (!%p160_p10), 0  }
   0xf   : > { %163 = sbr.rel (%p160_p10) target bundleno = 260 (0x104), region = 32  ;;  %429 = vmatprep.subr.bf16.mxu0 (!%p160_p10), %v582_v0  ;;  %435 = vmatprep.subr.bf16.mxu1 (!%p160_p10), %v582_v0  ;;  %vm207_vm1 = vcmask (!%p160_p10), 1042432   ;;  %v415_v5 = vld [vmem:[%s737_s2 + $0x4] sm:$0xf] (!%p160_p10)  ;;  %v195_v8 = vld [vmem:[%s736_s1] sm:$0x3] (!%p160_p10) }
  0x10   : > { %431 = vmatprep.mubr.msk.bf16.mxu0 (!%p160_p10), %vm583_vm0, %v582_v0  ;;  %437 = vmatprep.mubr.msk.bf16.mxu1 (!%p160_p10), %vm583_vm0, %v582_v0  ;;  %vm203_vm2 = vcmask (!%p160_p10), 48128   ;;  %v413_v9 = vld [vmem:[%s736_s1 + $0x2] sm:$0x3] (!%p160_p10)  ;;  %s183_s18 = sand.u32 (!%p160_p10), 1, %s564_s13   ;;  %s424_s26 = sshll.u32 (!%p160_p10), %s572_s15, 7 }
  0x11   : > { %501 = vset.pattern.permute.xlu0 (!%p160_p10), %v584_v2  ;;  %s409_s19 = sshll.u32 (!%p160_p10), %s183_s18, 3  ;;  %s585_s4 = smov (!%p160_p10), [#allocation2]  }
  0x12   : > { %200 = vperm.xlu0 (!%p160_p10), %501, %v197_v1   ;;  %s185_s21 = scalar_lea.vmem (!%p160_p10), [#allocation2], %s409_s19 }
  0x13   : > { %s326_s23 = sshll.u32 (!%p160_p10), %s185_s21, 4  ;;  %s682_s23 = int_to_ptr.vmem [resolvable:$true] %s326_s23 }
  0x14   : > { %s502_s30 = scalar_lea.vmem (!%p160_p10), %s682_s23, 128 }
  0x15   : > { %p503_p12 = scmp.ne.s32.totalorder (!%p160_p10), %s682_s23, %s502_s30 }
  0x16   : > { %s187_s28 = scalar_select %p186_p11, %s572_s15, 1  ;;  %260 = vperm.xlu0 %501, %v415_v5  }
  0x17   : > { %s689_s15 = scalar_lea.sflag [#allocation3], %s183_s18  ;;  %p504_p13 = pnand %p503_p12, %p648_p4 }
  0x18   : > { %s423_s29 = sshll.u32 %s187_s28, 3 }
  0x19   : > { %s193_s5 = scalar_lea.vmem %s735_s0, %s423_s29  ;;  %s687_s29 = scalar_lea.hbm %s738_s3, %s424_s26 }
  0x1a   : > { %v196_v3 = vld [vmem:[%s193_s5] sm:$0x7]  ;;  %v414_v4 = vld [vmem:[%s193_s5 + $0x4] sm:$0x7]  ;;  %p505_p0 = pneg %p504_p13  ;;  %s506_s5 = sshll.u32 %s585_s4, 4  ;;  %s507_s5 = int_to_ptr.vmem [resolvable:$false] %s506_s5 }
  0x1b   : > { %v209_v6 = vsel %vm207_vm1, %v196_v3, 0  ;;  %v267_v7 = vsel %vm207_vm1, %v414_v4, 0  ;;  %s508_s6 = scalar_lea.vmem %s507_s5, 256  ;;  %p509_p1 = scmp.lt.s32.totalorder %s682_s23, %s507_s5 }
  0x1c   : > { %430 = vmatpush3.bf16.msra.mxu0 %v209_v6  ;;  %436 = vmatpush3.bf16.msra.mxu1 %v267_v7  ;;  %p510_p2 = scmp.lt.s32.totalorder %s508_s6, %s502_s30 }
  0x1e   : > { %p511_p3 = por %p510_p2, %p509_p1 }
  0x1f   : > { %432 = vmatmul.mubr.msk.bf16.vlgmr.msra.gmra.mrb[0].mxu0 %vm203_vm2, %v195_v8  ;;  %438 = vmatmul.mubr.msk.bf16.vlgmr.msra.gmra.mrb[0].mxu1 %vm203_vm2, %v413_v9 }
  0x20   : > { %p512_p5 = pnand %p511_p3, %p505_p0 }
  0x91   : > { %v201_v10 = vpop.permute.xlu0 %200 }
  0x95   : > { %v261_v11 = vpop.permute.xlu0 %260 }
  0xf2   : > { %v245_v12 = vpop.f32.mrb[0].mxu0  ;;  %v303_v13 = vpop.f32.mrb[0].mxu1 }
  0xf3   : > { %v246_v14 = vadd.f32 %v245_v12, %v201_v10  ;;  %v304_v15 = vadd.f32 %v303_v13, %v261_v11  ;;  %v433_v16 = vpop.f32.mrb[1].mxu0  ;;  %v439_v17 = vpop.f32.mrb[1].mxu1 }
  0xf4   : > { %v248_v18 = vpop.f32.mrb[2].mxu0  ;;  %v306_v19 = vpop.f32.mrb[2].mxu1 }
  0xf5   : > { %251 = vst [vmem:[%s185_s21] sm:$0xf] %v246_v14  ;;  %417 = vst [vmem:[%s185_s21 + $0x4] sm:$0xf] %v304_v15  ;;  %v434_v20 = vpop.f32.mrb[3].mxu0  ;;  %v440_v21 = vpop.f32.mrb[3].mxu1 }
  0xf6   : > { %515 = shalt.err (!%p512_p5)
}
  0xf7   : > { %s516_s7 = scalar_lea.hbm %s687_s29, 128  ;;  %s520_s10 = scalar_lea.hbm %s738_s3, 256 }
  0xf8   : > { %p517_p6 = scmp.ne.s32.totalorder %s687_s29, %s516_s7  ;;  %p521_p10 = scmp.lt.u32.totalorder %s687_s29, %s738_s3 }
  0xf9   : > { %p522_p11 = scmp.lt.u32.totalorder %s520_s10, %s516_s7  ;;  %p524_p13 = scmp.lt.u32.totalorder %s516_s7, %s687_s29 }
  0xfa   : > { %p518_p7 = pnand %p517_p6, %p648_p4 }
  0xfb   : > { %p523_p12 = por %p522_p11, %p521_p10 }
  0xfc   : > { %p519_p9 = pneg %p518_p7 }
  0xfd   : > { %p525_p0 = por %p524_p13, %p523_p12 }
  0xff   : > { %p526_p1 = pnand %p525_p0, %p519_p9 }
 0x101   : > { %529 = shalt.err (!%p526_p1)
}
 0x102   : > { %s586_s19 = smov 64   ;;  %s587_s21 = smov 4  }
 0x103   : > { %441 = dma.vmem_to_hbm [thread:$0]  (%p648_p4), %s682_s23, 128, %s687_s29, %s689_s15, %s586_s19, %s586_s19, %s587_s21  }
 0x104 PF: > { %p447_p2 = scmp.ge.s32.totalorder %s580_s17, 2  ;;  %s341_s26 = sand.u32 1, %s560_s12  }
 0x105   : > { %s342_s27 = scalar_lea.sflag [#allocation3], %s341_s26 }
 0x106   : > { %p444_p3 = pnand %p447_p2, %p655_p8 }
 0x108   : > { %555 = dma.done.wait (!%p444_p3), %s342_s27, 128  }
 0x109   : > { %557 = vsyncadd (!%p444_p3), %s342_s27, 4294967168  ;;  %s16_s17 = sadd.s32 1, %s580_s17   ;;  %s741_s12 = smov %s564_s13 }
 0x10a   : > { %p13_p5 = scmp.ge.s32.totalorder %s16_s17, 4   ;;  %s742_s13 = smov %s568_s14 }
 0x10b   : > { %s743_s14 = smov %s661_s25  ;;  %s744_s15 = smov %s576_s16 }
 0x10c   : > { %s745_s16 = smov %s747_s20  ;;  %15 = sbr.rel (!%p13_p5) target bundleno = 4 (0x4), region = 71 }
 0x113   :  { %347 = vsyncpa [#allocation3], 1 }
 0x114   :  { %349 = vsyncpa [#allocation3 + $0x1], 1 }

</bundles_post_ra>
